<compile_context>
chip_gen: v5e
topology: v5e:2x2
jax: 0.10.0
libtpu: 0.0.40
codegen_flags: <defaults>
</compile_context>

<pallas_src>
import functools
import math

import jax
import jax.numpy as jnp
from jax.experimental import pallas as pl
from jax.experimental.pallas import tpu as pltpu


def _loss_with_ls_kernel(pred_ref, picked_ref, mask_ref, num_ref, den_ref, *,
                         off_value, conf_minus_off, k_const,
                         n_rows, block_rows, blocks_per_core):
    c = pl.program_id(0)   # partial / core index ("parallel")
    i = pl.program_id(1)   # row-block index within this partial ("arbitrary")

    @pl.when(i == 0)
    def _init():
        num_ref[...] = jnp.zeros_like(num_ref)
        den_ref[...] = jnp.zeros_like(den_ref)

    # Per-element work: cast + reduce-add only (the target gather was hoisted
    # to the XLA wrapper), so the kernel is HBM-bandwidth bound.
    row_sum = jnp.sum(pred_ref[...].astype(jnp.float32), axis=1, keepdims=True)  # (TN, 1)
    picked = picked_ref[...]      # (TN, 1) f32: pred[row, target[row]]
    msk = mask_ref[...]           # (TN, 1) f32

    # Smoothed-label KL collapses to:
    #   row_loss = K - (off * sum_j pred_ij + (conf - off) * picked_i)
    row_loss = k_const - (off_value * row_sum + conf_minus_off * picked)

    # Mask rows beyond the true N (ragged last block / clamped duplicate tail
    # blocks).  The select also discards NaN/Inf garbage from unspecified DMA
    # padding, so it must wrap the product, not just the mask.
    block_idx = c * blocks_per_core + i
    row_ids = block_idx * block_rows + jax.lax.broadcasted_iota(
        jnp.int32, msk.shape, 0)
    valid = row_ids < n_rows

    num_ref[...] += jnp.sum(jnp.where(valid, row_loss * msk, 0.0))
    den_ref[...] += jnp.sum(jnp.where(valid, msk, 0.0))


def _row_alignment(itemsize):
    if itemsize >= 4:
        return 8
    if itemsize == 2:
        return 16
    return 32


def _chip_profile():
    """Return (is_v7x, per-core VMEM bytes). Conservative fallbacks if unknown."""
    kind = ""
    try:
        kind = jax.devices()[0].device_kind.lower()
    except Exception:
        pass
    is_v7x = "v7" in kind
    vmem = None
    try:
        vmem = int(pltpu.get_tpu_info().vmem_capacity_bytes)
    except Exception:
        vmem = None
    if not vmem or vmem <= 0:
        vmem = 64 << 20                      # safe for every current generation
    if is_v7x:
        vmem = min(vmem, 64 << 20)           # per-TensorCore budget on v7x
    return is_v7x, vmem


def _choose_block_rows(n_rows, vocab, itemsize, input_budget, requested=None):
    """Row tile so the double-buffered (pred + picked + mask) tiles fit the budget."""
    # picked / mask are (tn, 1) f32 and are lane-padded to 128 in VMEM.
    per_row_bytes = vocab * itemsize + 2 * 128 * 4
    if requested is None:
        tn = input_budget // (2 * per_row_bytes)     # 2 = double buffering
    else:
        tn = int(requested)
    tn = min(max(int(tn), 1), n_rows)
    if tn < n_rows:
        align = _row_alignment(itemsize)
        tn = max(align, (tn // align) * align)
        tn = min(tn, n_rows)
    return tn, per_row_bytes


def loss_with_ls(prediction, target, mask, *, smooth,
                 block_rows=None, num_partials=None):
    """prediction: (B, T, V) log-probabilities; target, mask: (B, T)."""
    B, T, V = prediction.shape
    N = B * T

    confidence = float(1.0 - smooth)
    off_value = float(smooth / (V - 1)) if V > 1 else 0.0
    # K = sum_j labels_ij * log(labels_ij) — identical for every row; 0*log0 := 0
    # (matches PyTorch's KLDivLoss zeroing entries with target == 0).
    k_const = 0.0
    if confidence > 0.0:
        k_const += confidence * math.log(confidence)
    if off_value > 0.0:
        k_const += (V - 1) * off_value * math.log(off_value)

    pred2 = prediction.reshape(N, V)                 # native dtype (no f32 HBM copy)
    tgt2 = target.reshape(N, 1).astype(jnp.int32)
    mask2 = mask.reshape(N, 1).astype(jnp.float32)
    # Hoist the target-column gather out of the kernel: removes the per-element
    # iota/compare/select/mul chain from the VALU-slot budget.
    picked2 = jnp.take_along_axis(pred2, tgt2, axis=1).astype(jnp.float32)

    is_v7x, vmem_bytes = _chip_profile()
    # Double-buffered input footprint: ~70% of per-core VMEM, capped at 64 MiB
    # (=> ~32 MiB/pred buffer on v5e/v6e, ~22 MiB/pred buffer on v7x).
    input_budget = min(int(vmem_bytes * 0.70), 64 << 20)
    tn, per_row_bytes = _choose_block_rows(N, V, pred2.dtype.itemsize,
                                           input_budget, block_rows)
    num_blocks = (N + tn - 1) // tn

    if num_partials is None:
        num_partials = 2 if is_v7x else 1            # 2 TCs only on v7x
    nc = max(1, min(int(num_partials), num_blocks))  # partials (megacore)
    bpc = (num_blocks + nc - 1) // nc                # row blocks per partial

    footprint = 2 * tn * per_row_bytes               # double-buffered inputs
    vmem_limit = int(min(vmem_bytes, max(24 << 20, footprint + (12 << 20))))

    def row_block(c, i):
        # Clamp tail iterations of the last partial; their rows are masked
        # out in-kernel (row_ids >= N) so they contribute exactly zero.
        return jnp.minimum(c * bpc + i, num_blocks - 1)

    kernel = functools.partial(
        _loss_with_ls_kernel,
        off_value=off_value, conf_minus_off=confidence - off_value,
        k_const=k_const, n_rows=N, block_rows=tn, blocks_per_core=bpc)

    cost = pl.CostEstimate(
        flops=2 * N * V,
        transcendentals=0,
        bytes_accessed=N * V * pred2.dtype.itemsize + 2 * N * 4 + nc * 8)

    num, den = pl.pallas_call(
        kernel,
        out_shape=(jax.ShapeDtypeStruct((nc, 1, 1), jnp.float32),
                   jax.ShapeDtypeStruct((nc, 1, 1), jnp.float32)),
        grid_spec=pltpu.PrefetchScalarGridSpec(
            num_scalar_prefetch=0,
            grid=(nc, bpc),
            in_specs=[
                pl.BlockSpec((tn, V), lambda c, i: (row_block(c, i), 0)),
                pl.BlockSpec((tn, 1), lambda c, i: (row_block(c, i), 0)),
                pl.BlockSpec((tn, 1), lambda c, i: (row_block(c, i), 0)),
            ],
            out_specs=[
                pl.BlockSpec((1, 1, 1), lambda c, i: (c, 0, 0)),
                pl.BlockSpec((1, 1, 1), lambda c, i: (c, 0, 0)),
            ],
        ),
        compiler_params=pltpu.CompilerParams(
            dimension_semantics=("parallel", "arbitrary"),
            vmem_limit_bytes=vmem_limit),
        cost_estimate=cost,
    )(pred2, picked2, mask2)

    # Tiny final combine (nc partials) + division in XLA.
    # Note: if mask is all zeros this divides by zero — same as the PyTorch reference.
    return jnp.sum(num) / jnp.sum(den)


def _reference_loss(prediction, target, mask, *, smooth):
    """Plain-JAX reference mirroring the PyTorch forward."""
    B, T, V = prediction.shape
    N = B * T
    pred = prediction.reshape(N, V).astype(jnp.float32)
    tgt = target.reshape(N).astype(jnp.int32)
    msk = mask.reshape(N).astype(jnp.float32)
    confidence = 1.0 - smooth
    labels = jnp.full((N, V), smooth / (V - 1), dtype=jnp.float32)
    labels = labels.at[jnp.arange(N), tgt].set(confidence)
    loss = labels * (jnp.log(labels) - pred)
    return (loss.sum(axis=1) * msk).sum() / msk.sum()


if __name__ == "__main__":
    smooth = 0.1
    key = jax.random.PRNGKey(0)

    # --- Test 1: ragged N, small row tile → exercises the grid, the resident
    #     accumulators, the clamped tail block and the in-kernel row mask.
    B, T, V = 2, 11, 32
    k_logits, k_tgt, k_mask = jax.random.split(key, 3)
    logits = jax.random.normal(k_logits, (B, T, V), dtype=jnp.float32)
    prediction = jax.nn.log_softmax(logits, axis=-1)        # log-probs (KLDivLoss input)
    target = jax.random.randint(k_tgt, (B, T), 0, V, dtype=jnp.int32)
    mask = (jax.random.uniform(k_mask, (B, T)) > 0.25).astype(jnp.float32)
    mask = mask.at[0, 0].set(1.0)                           # mask not all zeros

    out = loss_with_ls(prediction, target, mask, smooth=smooth, block_rows=8)
    out = jax.block_until_ready(out)
    ref = _reference_loss(prediction, target, mask, smooth=smooth)
    assert jnp.allclose(out, ref, rtol=1e-5, atol=1e-5), (out, ref)

    # --- Test 2: bf16 prediction streamed in its native dtype, auto tile size,
    #     chip-dependent num_partials.
    B2, T2 = 2, 8
    k2a, k2b, k2c = jax.random.split(jax.random.PRNGKey(1), 3)
    logits2 = jax.random.normal(k2a, (B2, T2, V), dtype=jnp.float32)
    pred_bf16 = jax.nn.log_softmax(logits2, axis=-1).astype(jnp.bfloat16)
    target2 = jax.random.randint(k2b, (B2, T2), 0, V, dtype=jnp.int32)
    mask2 = (jax.random.uniform(k2c, (B2, T2)) > 0.25).astype(jnp.float32)
    mask2 = mask2.at[0, 0].set(1.0)

    out2 = loss_with_ls(pred_bf16, target2, mask2, smooth=smooth)
    out2 = jax.block_until_ready(out2)
    ref2 = _reference_loss(pred_bf16, target2, mask2, smooth=smooth)
    assert jnp.allclose(out2, ref2, rtol=1e-3, atol=1e-3), (out2, ref2)

    print("KERNEL_OK")
</pallas_src>

<mosaic_0001>
module attributes {stable_mosaic.version = 11 : i64} {
  func.func @_loss_with_ls_kernel(%arg0: i32, %arg1: i32, %arg2: memref<8x32xf32, #tpu.memory_space<vmem>>, %arg3: memref<8x1xf32, #tpu.memory_space<vmem>>, %arg4: memref<8x1xf32, #tpu.memory_space<vmem>>, %arg5: memref<1x1x1xf32, #tpu.memory_space<vmem>>, %arg6: memref<1x1x1xf32, #tpu.memory_space<vmem>>) attributes {dimension_semantics = [#tpu.dimension_semantics<parallel>, #tpu.dimension_semantics<arbitrary>], iteration_bounds = array<i64: 1, 3>, scalar_prefetch = 0 : i64, scratch_operands = 0 : i64, tpu.core_type = #tpu.core_type<tc>, window_params = [{transform_indices = @transform_0, window_bounds = array<i64: 8, 32>}, {transform_indices = @transform_1, window_bounds = array<i64: 8, 1>}, {transform_indices = @transform_2, window_bounds = array<i64: 8, 1>}, {transform_indices = @transform_3, window_bounds = array<i64: 1, 1, 1>}, {transform_indices = @transform_4, window_bounds = array<i64: 1, 1, 1>}]} {
    %c0_i32 = arith.constant 0 : i32
    %0 = arith.cmpi eq, %arg1, %c0_i32 : i32
    %1 = arith.extui %0 : i1 to i32
    %c0_i32_0 = arith.constant 0 : i32
    %2 = arith.cmpi ne, %1, %c0_i32_0 : i32
    scf.if %2 {
      %cst_25 = arith.constant 0.000000e+00 : f32
      %44 = vector.broadcast %cst_25 : f32 to vector<1x1x1xf32>
      %c0_26 = arith.constant 0 : index
      %c0_27 = arith.constant 0 : index
      %c0_28 = arith.constant 0 : index
      %45 = vector.load %arg5[%c0_26, %c0_27, %c0_28] : memref<1x1x1xf32, #tpu.memory_space<vmem>>, vector<1x1x1xf32>
      tpu.vector_store %arg5[%c0_26, %c0_27, %c0_28], %44 {strides = array<i32>} : memref<1x1x1xf32, #tpu.memory_space<vmem>>, vector<1x1x1xf32>,
      %cst_29 = arith.constant 0.000000e+00 : f32
      %46 = vector.broadcast %cst_29 : f32 to vector<1x1x1xf32>
      %c0_30 = arith.constant 0 : index
      %c0_31 = arith.constant 0 : index
      %c0_32 = arith.constant 0 : index
      %47 = vector.load %arg6[%c0_30, %c0_31, %c0_32] : memref<1x1x1xf32, #tpu.memory_space<vmem>>, vector<1x1x1xf32>
      tpu.vector_store %arg6[%c0_30, %c0_31, %c0_32], %46 {strides = array<i32>} : memref<1x1x1xf32, #tpu.memory_space<vmem>>, vector<1x1x1xf32>,
    } else {
    }
    %c0 = arith.constant 0 : index
    %c0_1 = arith.constant 0 : index
    %3 = vector.load %arg2[%c0, %c0_1] : memref<8x32xf32, #tpu.memory_space<vmem>>, vector<8x32xf32>
    %cst = arith.constant dense<0.000000e+00> : vector<8xf32>
    %4 = vector.multi_reduction <add>, %3, %cst [1] : vector<8x32xf32> to vector<8xf32>
    %5 = vector.shape_cast %4 : vector<8xf32> to vector<8x1xf32>
    %c0_2 = arith.constant 0 : index
    %c0_3 = arith.constant 0 : index
    %6 = vector.load %arg3[%c0_2, %c0_3] : memref<8x1xf32, #tpu.memory_space<vmem>>, vector<8x1xf32>
    %c0_4 = arith.constant 0 : index
    %c0_5 = arith.constant 0 : index
    %7 = vector.load %arg4[%c0_4, %c0_5] : memref<8x1xf32, #tpu.memory_space<vmem>>, vector<8x1xf32>
    %cst_6 = arith.constant 0.0032258064 : f32
    %8 = vector.broadcast %cst_6 : f32 to vector<8x1xf32>
    %9 = arith.mulf %8, %5 : vector<8x1xf32>
    %cst_7 = arith.constant 0.896774172 : f32
    %10 = vector.broadcast %cst_7 : f32 to vector<8x1xf32>
    %11 = arith.mulf %10, %6 : vector<8x1xf32>
    %12 = arith.addf %9, %11 : vector<8x1xf32>
    %cst_8 = arith.constant -0.668481708 : f32
    %13 = vector.broadcast %cst_8 : f32 to vector<8x1xf32>
    %14 = arith.subf %13, %12 : vector<8x1xf32>
    %c3_i32 = arith.constant 3 : i32
    %15 = arith.muli %arg0, %c3_i32 : i32
    %16 = arith.addi %15, %arg1 : i32
    %c8_i32 = arith.constant 8 : i32
    %17 = arith.muli %16, %c8_i32 : i32
    %18 = tpu.iota {dimensions = array<i32: 0>} : vector<8x1xi32>
    %19 = vector.broadcast %17 : i32 to vector<8x1xi32>
    %20 = arith.addi %19, %18 : vector<8x1xi32>
    %c22_i32 = arith.constant 22 : i32
    %21 = vector.broadcast %c22_i32 : i32 to vector<8x1xi32>
    %22 = arith.cmpi slt, %20, %21 : vector<8x1xi32>
    %c0_9 = arith.constant 0 : index
    %c0_10 = arith.constant 0 : index
    %c0_11 = arith.constant 0 : index
    %23 = vector.load %arg5[%c0_9, %c0_10, %c0_11] : memref<1x1x1xf32, #tpu.memory_space<vmem>>, vector<1x1x1xf32>
    %24 = arith.mulf %14, %7 : vector<8x1xf32>
    %cst_12 = arith.constant 0.000000e+00 : f32
    %25 = vector.broadcast %cst_12 : f32 to vector<8x1xf32>
    %26 = arith.select %22, %24, %25 : vector<8x1xi1>, vector<8x1xf32>
    %27 = vector.shape_cast %26 : vector<8x1xf32> to vector<1x8x1xf32>
    %cst_13 = arith.constant dense<0.000000e+00> : vector<1xf32>
    %28 = vector.multi_reduction <add>, %27, %cst_13 [1, 2] : vector<1x8x1xf32> to vector<1xf32>
    %29 = vector.shape_cast %28 : vector<1xf32> to vector<1x1x1xf32>
    %30 = vector.extract %29[0, 0, 0] : f32 from vector<1x1x1xf32>
    %31 = vector.broadcast %30 : f32 to vector<1x1x1xf32>
    %32 = arith.addf %23, %31 : vector<1x1x1xf32>
    %c0_14 = arith.constant 0 : index
    %c0_15 = arith.constant 0 : index
    %c0_16 = arith.constant 0 : index
    %33 = vector.load %arg5[%c0_14, %c0_15, %c0_16] : memref<1x1x1xf32, #tpu.memory_space<vmem>>, vector<1x1x1xf32>
    tpu.vector_store %arg5[%c0_14, %c0_15, %c0_16], %32 {strides = array<i32>} : memref<1x1x1xf32, #tpu.memory_space<vmem>>, vector<1x1x1xf32>,
    %c0_17 = arith.constant 0 : index
    %c0_18 = arith.constant 0 : index
    %c0_19 = arith.constant 0 : index
    %34 = vector.load %arg6[%c0_17, %c0_18, %c0_19] : memref<1x1x1xf32, #tpu.memory_space<vmem>>, vector<1x1x1xf32>
    %cst_20 = arith.constant 0.000000e+00 : f32
    %35 = vector.broadcast %cst_20 : f32 to vector<8x1xf32>
    %36 = arith.select %22, %7, %35 : vector<8x1xi1>, vector<8x1xf32>
    %37 = vector.shape_cast %36 : vector<8x1xf32> to vector<1x8x1xf32>
    %cst_21 = arith.constant dense<0.000000e+00> : vector<1xf32>
    %38 = vector.multi_reduction <add>, %37, %cst_21 [1, 2] : vector<1x8x1xf32> to vector<1xf32>
    %39 = vector.shape_cast %38 : vector<1xf32> to vector<1x1x1xf32>
    %40 = vector.extract %39[0, 0, 0] : f32 from vector<1x1x1xf32>
    %41 = vector.broadcast %40 : f32 to vector<1x1x1xf32>
    %42 = arith.addf %34, %41 : vector<1x1x1xf32>
    %c0_22 = arith.constant 0 : index
    %c0_23 = arith.constant 0 : index
    %c0_24 = arith.constant 0 : index
    %43 = vector.load %arg6[%c0_22, %c0_23, %c0_24] : memref<1x1x1xf32, #tpu.memory_space<vmem>>, vector<1x1x1xf32>
    tpu.vector_store %arg6[%c0_22, %c0_23, %c0_24], %42 {strides = array<i32>} : memref<1x1x1xf32, #tpu.memory_space<vmem>>, vector<1x1x1xf32>,
    return
  }
  func.func @transform_0(%arg0: i32, %arg1: i32) -> (i32, i32) {
    %c3_i32 = arith.constant 3 : i32
    %0 = arith.muli %arg0, %c3_i32 : i32
    %1 = arith.addi %0, %arg1 : i32
    %c2_i32 = arith.constant 2 : i32
    %2 = arith.minsi %1, %c2_i32 : i32
    %c0_i32 = arith.constant 0 : i32
    %c0_i32_0 = arith.constant 0 : i32
    return %2, %c0_i32 : i32, i32
  }
  func.func @transform_1(%arg0: i32, %arg1: i32) -> (i32, i32) {
    %c3_i32 = arith.constant 3 : i32
    %0 = arith.muli %arg0, %c3_i32 : i32
    %1 = arith.addi %0, %arg1 : i32
    %c2_i32 = arith.constant 2 : i32
    %2 = arith.minsi %1, %c2_i32 : i32
    %c0_i32 = arith.constant 0 : i32
    %c0_i32_0 = arith.constant 0 : i32
    return %2, %c0_i32 : i32, i32
  }
  func.func @transform_2(%arg0: i32, %arg1: i32) -> (i32, i32) {
    %c3_i32 = arith.constant 3 : i32
    %0 = arith.muli %arg0, %c3_i32 : i32
    %1 = arith.addi %0, %arg1 : i32
    %c2_i32 = arith.constant 2 : i32
    %2 = arith.minsi %1, %c2_i32 : i32
    %c0_i32 = arith.constant 0 : i32
    %c0_i32_0 = arith.constant 0 : i32
    return %2, %c0_i32 : i32, i32
  }
  func.func @transform_3(%arg0: i32, %arg1: i32) -> (i32, i32, i32) {
    %c0_i32 = arith.constant 0 : i32
    %c0_i32_0 = arith.constant 0 : i32
    %c0_i32_1 = arith.constant 0 : i32
    return %arg0, %c0_i32, %c0_i32_0 : i32, i32, i32
  }
  func.func @transform_4(%arg0: i32, %arg1: i32) -> (i32, i32, i32) {
    %c0_i32 = arith.constant 0 : i32
    %c0_i32_0 = arith.constant 0 : i32
    %c0_i32_1 = arith.constant 0 : i32
    return %arg0, %c0_i32, %c0_i32_0 : i32, i32, i32
  }
}

</mosaic_0001>

<bundles_post_ra>
// kernel: tpu_custom_call.1
= control target key start
LH: loop header
LB: loop body
LE: loop exit
PB: predicated region body
PF: predicated region fallthrough
CT: control target
= control target key end

     0   :  { %10 = vsyncpa [#allocation3], 0  ;;  %s738_s0 = inlined_call_operand.vmem [shape: f32[22,32], index: 0, kind: input, shape index: {}]   ;;  %s739_s1 = inlined_call_operand.vmem [shape: f32[22,1], index: 1, kind: input, shape index: {}]   ;;  %s740_s2 = inlined_call_operand.vmem [shape: f32[22,1], index: 2, kind: input, shape index: {}]   ;;  %s741_s3 = inlined_call_operand.hbm [shape: f32[1,1,1], index: 3, kind: output, shape index: {0}]   ;;  %s742_s4 = inlined_call_operand.hbm [shape: f32[1,1,1], index: 4, kind: output, shape index: {1}]  }
   0x1   :  { %11 = vsyncpa [#allocation5], 0  ;;  %s671_s15 = smov 0   ;;  %s673_s16 = smov 0  }
   0x2   :  { %s675_s17 = smov 0  }
   0x3 LB: > { %s488_s18 = sadd.s32 4294967295, %s641_s17   ;;  %s26_s19 = sadd.s32 1, %s637_s16  ;;  %s641_s17 = sphi %s675_s17, %s17_s17   ;;  %s637_s16 = sphi %s673_s16, %s745_s16   ;;  %s633_s15 = sphi %s671_s15, %s744_s15  }
   0x4   : > { %p27_p0 = scmp.ge.s32.totalorder %s26_s19, 3  ;;  %p491_p1 = scmp.ge.s32.totalorder %s641_s17, 1 }
   0x5   : > { %p244_p2 = scmp.lt.s32.totalorder %s641_s17, 4 }
   0x6   : > { %s747_s19 = smov (%p27_p0, %s26_s19), 0 }
   0x7   : > { %p245_p3 = pnand %p491_p1, %p244_p2 }
   0x8   : > { %p286_p4 = scmp.lt.s32.totalorder (!%p245_p3), %s633_s15, 2  ;;  %p504_p5 = scmp.ne.s32.totalorder (!%p245_p3), %s633_s15, 0 }
   0x9   : > { %248 = sbr.rel (%p245_p3) target bundleno = 339 (0x153), region = 32 }
   0xe   : > { %s287_s20 = scalar_select %p286_p4, %s633_s15, 2 }
   0xf   : > { %323 = sbr.rel (%p504_p5) target bundleno = 23 (0x17), region = 36 }
  0x10   : > { %s749_s20 = smov (!%p286_p4, %s287_s20), 2 }
  0x11   : > { %s495_s21 = sshll.u32 %s749_s20, 3 }
  0x12   : > { %s291_s24 = scalar_lea.vmem %s738_s0, %s495_s21  ;;  %s303_s27 = scalar_lea.vmem %s739_s1, %s495_s21 }
  0x13   : > { %s315_s30 = scalar_lea.vmem %s740_s2, %s495_s21 }
  0x14   : > { %vm324_vm0 = vcmask 0   ;;  %v643_v0 = vmov 0.0  }
  0x15   : > { %325 = vst.msk [vmem:[#allocation2] sm:$0x1] %vm324_vm0, %v643_v0 }
  0x16   : > { %326 = vst.msk [vmem:[#allocation4] sm:$0x1] %vm324_vm0, %v643_v0 }
  0x17 PF: > { %v327_v1 = vld [vmem:[%s291_s24] sm:$0xff]  ;;  %vm328_vm1 = vcmask 261120   ;;  %s505_s5 = sshll.u32 %s633_s15, 3  ;;  %v341_v3 = vlaneseq  ;;  %vm349_vm3 = vcmask 7168   ;;  %s644_s6 = smov [#allocation2]   ;;  %vm362_vm4 = vcmask 0  }
  0x18   : > { %v329_v2 = vsel %vm328_vm1, %v327_v1, 0.0  ;;  %v343_v5 = vstv %s505_s5  ;;  %v333_v7 = vld [vmem:[%s315_s30] sm:$0xff]  ;;  %s386_s7 = sshll.u32 %s644_s6, 4  ;;  %s388_s10 = sshll.u32 %s741_s3, 4  ;;  %s387_s7 = int_to_ptr.vmem [resolvable:$true] %s386_s7  ;;  %s389_s10 = int_to_ptr.hbm [resolvable:$true] %s388_s10 }
  0x19   : > { %330 = vadd.xlane.f32.xlu0 %v329_v2  ;;  %v342_v4 = vshrl.u32 %v341_v3, 7  ;;  %v332_v10 = vld [vmem:[%s303_s27] sm:$0xff]  ;;  %s645_s11 = smov [#allocation4]   ;;  %s401_s20 = sshll.u32 %s742_s4, 4  ;;  %s402_s20 = int_to_ptr.hbm [resolvable:$true] %s401_s20 }
  0x1a   : > { %v335_v11 = vmul.f32 0.8967742, %v332_v10  ;;  %s399_s12 = sshll.u32 %s645_s11, 4  ;;  %p713_p6 = scmp.eq.s32.totalorder %s488_s18, 2  ;;  %s400_s12 = int_to_ptr.vmem [resolvable:$true] %s399_s12 }
  0x1b   : > { %v344_v6 = vadd.s32 %v343_v5, %v342_v4 }
  0x1c   : > { %v346_v33 = vld [vmem:[#allocation2] sm:$0x1] }
  0x1d   : > { %vm345_vm2 = vcmp.lt.s32.totalorder %v344_v6, 22  ;;  %v364_v34 = vld [vmem:[#allocation4] sm:$0x1] }
  0x1e   : > { %v365_v8 = vsel %vm345_vm2, %v333_v7, 0.0 }
  0x1f   : > { %v366_v9 = vsel %vm349_vm3, %v365_v8, 0.0 }
  0x20   : > { %367 = vadd.xlane.f32.xlu1 %v366_v9 }
  0x8c   : > { %v331_v12 = vpop.xlane.xlu0 %330 }
  0x8d   : > { %v334_v13 = vmul.f32 0.0032258064, %v331_v12 }
  0x8f   : > { %v336_v14 = vadd.f32 %v335_v11, %v334_v13 }
  0x91   : > { %v337_v15 = vsub.f32 -0.6684817, %v336_v14 }
  0x93   : > { %v347_v16 = vmul.f32 %v337_v15, %v333_v7  ;;  %v368_v19 = vpop.xlane.xlu1 %367 }
  0x94   : > { %v369_v20 = vrot.slane %v368_v19, 4 }
  0x95   : > { %v348_v17 = vsel %vm345_vm2, %v347_v16, 0.0 }
  0x96   : > { %v350_v18 = vsel %vm349_vm3, %v348_v17, 0.0  ;;  %v370_v21 = vadd.f32 %v369_v20, %v368_v19 }
  0x97   : > { %351 = vadd.xlane.f32.xlu0 %v350_v18 }
  0x98   : > { %v371_v22 = vrot.slane %v370_v21, 2 }
  0x9a   : > { %v372_v26 = vadd.f32 %v371_v22, %v370_v21 }
  0x9c   : > { %v373_v29 = vrot.slane %v372_v26, 1 }
  0x9e   : > { %v374_v32 = vadd.f32 %v373_v29, %v372_v26 }
 0x10a   : > { %v352_v23 = vpop.xlane.xlu0 %351 }
 0x10b   : > { %v353_v24 = vrot.slane %v352_v23, 4 }
 0x10d   : > { %v354_v25 = vadd.f32 %v353_v24, %v352_v23 }
 0x10f   : > { %v355_v27 = vrot.slane %v354_v25, 2 }
 0x111   : > { %v356_v28 = vadd.f32 %v355_v27, %v354_v25 }
 0x113   : > { %v357_v30 = vrot.slane %v356_v28, 1 }
 0x115   : > { %v358_v31 = vadd.f32 %v357_v30, %v356_v28 }
 0x117   : > { %512 = vpush %v358_v31 }
 0x118   : > { %514 = vpush %v374_v32 }
 0x148   : > { %s513_s13 = spop %512 }
 0x149   : > { %v360_v35 = vstv %s513_s13  ;;  %s515_s21 = spop %514 }
 0x14a   : > { %v361_v36 = vadd.f32 %v360_v35, %v346_v33  ;;  %v376_v37 = vstv %s515_s21 }
 0x14b   : > { %v377_v38 = vadd.f32 %v376_v37, %v364_v34 }
 0x14c   : > { %363 = vst.msk [vmem:[#allocation2] sm:$0x1] %vm362_vm4, %v361_v36 }
 0x14d   : > { %517 = dma.vmem_to_hbm [thread:$0]  (%p713_p6), %s387_s7, 16, %s389_s10, [#allocation3]   ;;  %378 = vst.msk [vmem:[#allocation4] sm:$0x1] %vm362_vm4, %v377_v38 }
 0x14e   : > { %519 = dma.vmem_to_hbm [thread:$0]  (%p713_p6), %s400_s12, 16, %s402_s20, [#allocation5]  }
 0x14f   : > { %624 = dma.done.wait (%p713_p6), [#allocation3], 16  }
 0x150   : > { %626 = vsyncadd (%p713_p6), [#allocation3], 4294967280 }
 0x151   : > { %628 = dma.done.wait (%p713_p6), [#allocation5], 16  }
 0x152   : > { %630 = vsyncadd (%p713_p6), [#allocation5], 4294967280 }
 0x153 PF: > { %s17_s17 = sadd.s32 1, %s641_s17   ;;  %s744_s15 = smov %s637_s16 }
 0x154   : > { %p14_p7 = scmp.ge.s32.totalorder %s17_s17, 5   ;;  %s745_s16 = smov %s747_s19 }
 0x156   :  { %16 = sbr.rel (!%p14_p7) target bundleno = 3 (0x3), region = 79 }
 0x15b   :  { %420 = vsyncpa [#allocation3], 1 }
 0x15c   :  { %422 = vsyncpa [#allocation3 + $0x1], 1 }
 0x15d   :  { %423 = vsyncpa [#allocation5], 1 }

</bundles_post_ra>
